<compile_context>
chip_gen: v7x
topology: tpu7x:2x2x1
jax: 0.10.0
libtpu: 0.0.40
codegen_flags: <defaults>
</compile_context>

<pallas_src>
import jax
import jax.numpy as jnp
from jax import lax
from jax.experimental import pallas as pl
from jax.experimental.pallas import tpu as pltpu


def _round_up(x, m):
    return (x + m - 1) // m * m


def _se_kernel(ls_ref, sv_ref, x1_ref, x2_ref, o_ref):
    # Scalars from SMEM (scalar-unit work, effectively free).
    ls = ls_ref[0]
    sv = sv_ref[0]
    inv_ls2 = 1.0 / (ls * ls)
    sv2 = sv * sv

    x1 = x1_ref[...]  # (TN, D) f32
    x2 = x2_ref[...]  # (TM, D) f32

    # Fold 1/ls^2 into the thin LHS operand once (O(TN*D)) instead of
    # scaling the full (TN, TM) cross tile (O(TN*TM)).
    x1s = x1 * inv_ls2

    # (x1 @ x2^T) / ls^2 on the MXU, no explicit transpose of x2.
    cross = lax.dot_general(
        x1s, x2,
        dimension_numbers=(((1,), (1,)), ((), ())),
        preferred_element_type=jnp.float32,
    )  # (TN, TM)

    # Pre-scaled row norms (O(TN + TM) bias vectors):
    #   s1 = -||x1||^2 / (2 ls^2),  s2 = -||x2||^2 / (2 ls^2)
    s1 = -0.5 * jnp.sum(x1 * x1s, axis=1, keepdims=True)   # (TN, 1)
    s2 = (-0.5 * inv_ls2) * jnp.sum(x2 * x2, axis=1)        # (TM,)

    # sv^2 * exp(-0.5 * sqdist / ls^2) with sqdist expanded and folded.
    o_ref[...] = sv2 * jnp.exp(cross + s1 + s2[None, :])


def squared_exponential_kernel(x1, x2, length_scale, signal_variance,
                               *, tn=512, tm=512):
    """x1: (N, D), x2: (M, D) -> (N, M) float32 covariance."""
    x1 = jnp.asarray(x1, jnp.float32)
    x2 = jnp.asarray(x2, jnp.float32)
    N, D = x1.shape
    M, D2 = x2.shape
    assert D == D2, "feature dims must match"

    # Tile sizes: sublane-aligned TN (mult of 8), lane-dense TM (mult of 128).
    # 512x512 f32 output tiles (+ two thin (T, D) input tiles), double-buffered,
    # stay within a few MiB of VMEM -> safe on v5e/v6e (128 MiB) and v7x (64 MiB).
    TN = min(tn, _round_up(N, 8))
    TM = min(tm, _round_up(M, 128))

    Np = _round_up(N, TN)
    Mp = _round_up(M, TM)
    x1p = jnp.pad(x1, ((0, Np - N), (0, 0))) if Np != N else x1
    x2p = jnp.pad(x2, ((0, Mp - M), (0, 0))) if Mp != M else x2

    ls = jnp.asarray(length_scale, dtype=jnp.float32).reshape((1,))
    sv = jnp.asarray(signal_variance, dtype=jnp.float32).reshape((1,))

    grid = (Np // TN, Mp // TM)

    out = pl.pallas_call(
        _se_kernel,
        out_shape=jax.ShapeDtypeStruct((Np, Mp), jnp.float32),
        grid=grid,
        in_specs=[
            pl.BlockSpec(memory_space=pltpu.MemorySpace.SMEM),   # length_scale
            pl.BlockSpec(memory_space=pltpu.MemorySpace.SMEM),   # signal_variance
            pl.BlockSpec((TN, D), lambda i, j: (i, 0)),           # x1 row tile
            pl.BlockSpec((TM, D), lambda i, j: (j, 0)),           # x2 row tile
        ],
        out_specs=pl.BlockSpec((TN, TM), lambda i, j: (i, j)),
        compiler_params=pltpu.CompilerParams(
            dimension_semantics=("parallel", "parallel")),
    )(ls, sv, x1p, x2p)

    return out[:N, :M]


def _reference(x1, x2, length_scale, signal_variance):
    sqdist = (
        jnp.sum(x1 ** 2, 1).reshape(-1, 1)
        + jnp.sum(x2 ** 2, 1)
        - 2.0 * (x1 @ x2.T)
    )
    return (signal_variance ** 2) * jnp.exp(-0.5 * sqdist / (length_scale ** 2))


if __name__ == "__main__":
    # Deterministic parameters (match nn.Parameter(torch.tensor([v])) scalars).
    length_scale = 1.5
    signal_variance = 0.8

    key = jax.random.PRNGKey(0)
    k1, k2, k3, k4 = jax.random.split(key, 4)

    # Case 1: small shapes matching the module's toy usage.
    N, M, D = 16, 16, 32
    x1 = jax.random.normal(k1, (N, D), dtype=jnp.float32)
    x2 = jax.random.normal(k2, (M, D), dtype=jnp.float32)
    out = jax.block_until_ready(
        squared_exponential_kernel(x1, x2, length_scale, signal_variance))
    ref = _reference(x1, x2, length_scale, signal_variance)
    assert out.shape == (N, M)
    assert jnp.allclose(out, ref, atol=1e-5, rtol=1e-5)

    # Case 2: non-tile-aligned shapes with small tiles to exercise the 2-D grid
    # (3 x 2 grid after padding) and the pad/slice path.
    N2, M2, D2 = 80, 200, 32
    x1b = jax.random.normal(k3, (N2, D2), dtype=jnp.float32)
    x2b = jax.random.normal(k4, (M2, D2), dtype=jnp.float32)
    out2 = jax.block_until_ready(
        squared_exponential_kernel(x1b, x2b, length_scale, signal_variance,
                                   tn=32, tm=128))
    ref2 = _reference(x1b, x2b, length_scale, signal_variance)
    assert out2.shape == (N2, M2)
    assert jnp.allclose(out2, ref2, atol=1e-5, rtol=1e-5)

    print("KERNEL_OK")
</pallas_src>

<mosaic_0001>
module attributes {stable_mosaic.version = 11 : i64} {
  func.func @_se_kernel(%arg0: i32, %arg1: i32, %arg2: memref<1xf32, #tpu.memory_space<smem>>, %arg3: memref<1xf32, #tpu.memory_space<smem>>, %arg4: memref<16x32xf32, #tpu.memory_space<vmem>>, %arg5: memref<128x32xf32, #tpu.memory_space<vmem>>, %arg6: memref<16x128xf32, #tpu.memory_space<vmem>>) attributes {dimension_semantics = [#tpu.dimension_semantics<parallel>, #tpu.dimension_semantics<parallel>], iteration_bounds = array<i64: 1, 1>, scalar_prefetch = 0 : i64, scratch_operands = 0 : i64, tpu.core_type = #tpu.core_type<tc>, window_params = [{transform_indices = @transform_0, window_bounds = array<i64: 1>}, {transform_indices = @transform_1, window_bounds = array<i64: 1>}, {transform_indices = @transform_2, window_bounds = array<i64: 16, 32>}, {transform_indices = @transform_3, window_bounds = array<i64: 128, 32>}, {transform_indices = @transform_4, window_bounds = array<i64: 16, 128>}]} {
    %c0 = arith.constant 0 : index
    %0 = memref.load %arg2[%c0] : memref<1xf32, #tpu.memory_space<smem>>
    %c0_0 = arith.constant 0 : index
    %1 = memref.load %arg3[%c0_0] : memref<1xf32, #tpu.memory_space<smem>>
    %2 = arith.mulf %0, %0 : f32
    %cst = arith.constant 1.000000e+00 : f32
    %3 = arith.divf %cst, %2 : f32
    %4 = arith.mulf %1, %1 : f32
    %c0_1 = arith.constant 0 : index
    %c0_2 = arith.constant 0 : index
    %5 = vector.load %arg4[%c0_1, %c0_2] : memref<16x32xf32, #tpu.memory_space<vmem>>, vector<16x32xf32>
    %c0_3 = arith.constant 0 : index
    %c0_4 = arith.constant 0 : index
    %6 = vector.load %arg5[%c0_3, %c0_4] : memref<128x32xf32, #tpu.memory_space<vmem>>, vector<128x32xf32>
    %7 = vector.broadcast %3 : f32 to vector<16x32xf32>
    %8 = arith.mulf %5, %7 : vector<16x32xf32>
    %cst_5 = arith.constant dense<0.000000e+00> : vector<16x128xf32>
    %9 = tpu.matmul %8, %6, %cst_5 {dimension_numbers = #tpu.dot_dimension_numbers<[1], [1], [0], [0], [0, 0, 1, 0], [], []>} : vector<16x32xf32>, vector<128x32xf32>, vector<16x128xf32> -> vector<16x128xf32>
    %10 = arith.mulf %5, %8 : vector<16x32xf32>
    %cst_6 = arith.constant dense<0.000000e+00> : vector<16xf32>
    %11 = vector.multi_reduction <add>, %10, %cst_6 [1] : vector<16x32xf32> to vector<16xf32>
    %12 = vector.shape_cast %11 : vector<16xf32> to vector<16x1xf32>
    %cst_7 = arith.constant -5.000000e-01 : f32
    %13 = vector.broadcast %cst_7 : f32 to vector<16x1xf32>
    %14 = arith.mulf %13, %12 : vector<16x1xf32>
    %cst_8 = arith.constant -5.000000e-01 : f32
    %15 = arith.mulf %cst_8, %3 : f32
    %16 = arith.mulf %6, %6 : vector<128x32xf32>
    %cst_9 = arith.constant dense<0.000000e+00> : vector<128xf32>
    %17 = vector.multi_reduction <add>, %16, %cst_9 [1] : vector<128x32xf32> to vector<128xf32>
    %18 = vector.broadcast %15 : f32 to vector<128xf32>
    %19 = arith.mulf %18, %17 : vector<128xf32>
    %20 = vector.broadcast %14 : vector<16x1xf32> to vector<16x128xf32>
    %21 = arith.addf %9, %20 : vector<16x128xf32>
    %22 = vector.shape_cast %19 : vector<128xf32> to vector<1x128xf32>
    %23 = vector.broadcast %22 : vector<1x128xf32> to vector<16x128xf32>
    %24 = arith.addf %21, %23 : vector<16x128xf32>
    %25 = math.exp %24 : vector<16x128xf32>
    %26 = vector.broadcast %4 : f32 to vector<16x128xf32>
    %27 = arith.mulf %26, %25 : vector<16x128xf32>
    %c0_10 = arith.constant 0 : index
    %c0_11 = arith.constant 0 : index
    %28 = vector.load %arg6[%c0_10, %c0_11] : memref<16x128xf32, #tpu.memory_space<vmem>>, vector<16x128xf32>
    tpu.vector_store %arg6[%c0_10, %c0_11], %27 {strides = array<i32>} : memref<16x128xf32, #tpu.memory_space<vmem>>, vector<16x128xf32>,
    return
  }
  func.func @transform_0(%arg0: i32, %arg1: i32) -> i32 {
    %c0_i32 = arith.constant 0 : i32
    %c0_i32_0 = arith.constant 0 : i32
    return %c0_i32 : i32
  }
  func.func @transform_1(%arg0: i32, %arg1: i32) -> i32 {
    %c0_i32 = arith.constant 0 : i32
    %c0_i32_0 = arith.constant 0 : i32
    return %c0_i32 : i32
  }
  func.func @transform_2(%arg0: i32, %arg1: i32) -> (i32, i32) {
    %c0_i32 = arith.constant 0 : i32
    %c0_i32_0 = arith.constant 0 : i32
    return %arg0, %c0_i32 : i32, i32
  }
  func.func @transform_3(%arg0: i32, %arg1: i32) -> (i32, i32) {
    %c0_i32 = arith.constant 0 : i32
    %c0_i32_0 = arith.constant 0 : i32
    return %arg1, %c0_i32 : i32, i32
  }
  func.func @transform_4(%arg0: i32, %arg1: i32) -> (i32, i32) {
    %c0_i32 = arith.constant 0 : i32
    return %arg0, %arg1 : i32, i32
  }
}

</mosaic_0001>

<bundles_post_ra>
// kernel: tpu_custom_call.1
= control target key start
LH: loop header
LB: loop body
LE: loop exit
PB: predicated region body
PF: predicated region fallthrough
CT: control target
= control target key end

     0   :  { %vm50_vm0 = vcmask 261120   ;;  %s807_s0 = inlined_call_operand.<no memory space> [shape: f32[1], index: 0, kind: input, shape index: {}]   ;;  %s808_s1 = inlined_call_operand.<no memory space> [shape: f32[1], index: 1, kind: input, shape index: {}]   ;;  %s809_s2 = inlined_call_operand.vmem [shape: f32[16,32], index: 2, kind: input, shape index: {}]   ;;  %s810_s3 = inlined_call_operand.vmem [shape: f32[128,32], index: 3, kind: input, shape index: {}]   ;;  %s811_s4 = inlined_call_operand.hbm [shape: f32[16,128], index: 4, kind: output, shape index: {}]  }
   0x1   :  { %v31_v0 = vld [vmem:[%s810_s3 + $0x10] sm:$0xff]  ;;  %v29_v1 = vld [vmem:[%s810_s3] sm:$0xff]  ;;  %v30_v2 = vld [vmem:[%s810_s3 + $0x8] sm:$0xff]  ;;  %s22_s23 = smul.f32 %s807_s0, %s807_s0 }
   0x2   :  { %v62_v3 = vmul.f32 %v31_v0, %v31_v0  ;;  %v508_v4 = vpack.c.bf16 %v30_v2, %v29_v1  ;;  %vm634_vm1 = vmpackc.low %vm50_vm0, %vm50_vm0  ;;  %v60_v6 = vmul.f32 %v29_v1, %v29_v1  ;;  %v32_v7 = vld [vmem:[%s810_s3 + $0x18] sm:$0xff]  ;;  %v61_v8 = vmul.f32 %v30_v2, %v30_v2  ;;  %v34_v11 = vld [vmem:[%s810_s3 + $0x28] sm:$0xff] }
   0x3   :  { %v63_v9 = vmul.f32 %v32_v7, %v32_v7  ;;  %v514_v10 = vpack.c.bf16 %v32_v7, %v31_v0  ;;  %v33_v12 = vld [vmem:[%s810_s3 + $0x20] sm:$0xff]  ;;  %v23_v13 = vstv %s22_s23  ;;  %v65_v18 = vmul.f32 %v34_v11, %v34_v11  ;;  %v36_v20 = vld [vmem:[%s810_s3 + $0x38] sm:$0xff]  ;;  %v35_v21 = vld [vmem:[%s810_s3 + $0x30] sm:$0xff] }
   0x4   :  { %v82_v14 = vsel %vm50_vm0, %v62_v3, 0.0  ;;  %510 = vmatprep.subr.msk.bf16.mxu0 %vm634_vm1, %v508_v4  ;;  %v76_v15 = vsel %vm50_vm0, %v60_v6, 0.0  ;;  %561 = vrcp.f32 %v23_v13  ;;  %v79_v17 = vsel %vm50_vm0, %v61_v8, 0.0 }
   0x5   :  { %83 = vadd.xlane.f32.xlu1 %v82_v14  ;;  %77 = vadd.xlane.f32.xlu0 %v76_v15  ;;  %v85_v16 = vsel %vm50_vm0, %v63_v9, 0.0  ;;  %v64_v19 = vmul.f32 %v33_v12, %v33_v12 }
   0x6   :  { %513 = vmatpush3.bf16.xpose.msk.msra.mxu0 %vm634_vm1, %v508_v4 }
   0x7   :  { %516 = vmatprep.subr.msk.bf16.mxu0 %vm634_vm1, %v514_v10 }
   0x8   :  { %11 = vsyncpa [#allocation5], 0  ;;  %v91_v22 = vsel %vm50_vm0, %v65_v18, 0.0  ;;  %v88_v23 = vsel %vm50_vm0, %v64_v19, 0.0  ;;  %v67_v24 = vmul.f32 %v36_v20, %v36_v20  ;;  %v66_v25 = vmul.f32 %v35_v21, %v35_v21  ;;  %v38_v27 = vld [vmem:[%s810_s3 + $0x48] sm:$0xff]  ;;  %v37_v28 = vld [vmem:[%s810_s3 + $0x40] sm:$0xff]  ;;  %s26_s28 = smul.f32 %s808_s1, %s808_s1 }
   0x9   :  { %86 = vadd.xlane.f32.xlu1 %v85_v16  ;;  %80 = vadd.xlane.f32.xlu0 %v79_v17  ;;  %v520_v26 = vpack.c.bf16 %v34_v11, %v33_v12  ;;  %v69_v31 = vmul.f32 %v38_v27, %v38_v27  ;;  %v68_v32 = vmul.f32 %v37_v28, %v37_v28  ;;  %v40_v34 = vld [vmem:[%s810_s3 + $0x58] sm:$0xff]  ;;  %v39_v35 = vld [vmem:[%s810_s3 + $0x50] sm:$0xff]  ;;  %v42_v41 = vld [vmem:[%s810_s3 + $0x68] sm:$0xff]  ;;  %v286_v6 = vlaneseq  ;;  %s591_s29 = smov [#allocation4]  }
   0xa   :  { %v97_v29 = vsel %vm50_vm0, %v67_v24, 0.0  ;;  %v94_v30 = vsel %vm50_vm0, %v66_v25, 0.0  ;;  %v71_v38 = vmul.f32 %v40_v34, %v40_v34  ;;  %v70_v39 = vmul.f32 %v39_v35, %v39_v35  ;;  %v41_v42 = vld [vmem:[%s810_s3 + $0x60] sm:$0xff]  ;;  %v44_v47 = vld [vmem:[%s810_s3 + $0x78] sm:$0xff]  ;;  %v43_v48 = vld [vmem:[%s810_s3 + $0x70] sm:$0xff]  ;;  %s426_s30 = sshll.u32 %s591_s29, 4  ;;  %s427_s30 = int_to_ptr.vmem [resolvable:$true] %s426_s30 }
   0xb   :  { %v103_v36 = vsel %vm50_vm0, %v69_v31, 0.0  ;;  %v100_v37 = vsel %vm50_vm0, %v68_v32, 0.0  ;;  %v526_v40 = vpack.c.bf16 %v36_v20, %v35_v21  ;;  %v73_v45 = vmul.f32 %v42_v41, %v42_v41  ;;  %v28_v59 = vld [vmem:[%s809_s2 + $0x8] sm:$0xff]  ;;  %v27_v60 = vld [vmem:[%s809_s2] sm:$0xff]  ;;  %s567_s5 = scalar_lea.vmem %s427_s30, 256  ;;  %p572_p1 = scmp.lt.s32.totalorder %s427_s30, %s427_s30 }
   0xc   :  { %v109_v43 = vsel %vm50_vm0, %v71_v38, 0.0  ;;  %v106_v44 = vsel %vm50_vm0, %v70_v39, 0.0  ;;  %v72_v46 = vmul.f32 %v41_v42, %v41_v42  ;;  %v75_v51 = vmul.f32 %v44_v47, %v44_v47  ;;  %p568_p0 = scmp.ne.s32.totalorder %s427_s30, %s567_s5  ;;  %p573_p2 = scmp.lt.s32.totalorder %s567_s5, %s567_s5 }
   0xd   :  { %92 = vadd.xlane.f32.xlu1 %v91_v22  ;;  %89 = vadd.xlane.f32.xlu0 %v88_v23  ;;  %v115_v49 = vsel %vm50_vm0, %v73_v45, 0.0  ;;  %v74_v52 = vmul.f32 %v43_v48, %v43_v48  ;;  %v532_v53 = vpack.c.bf16 %v38_v27, %v37_v28  ;;  %v538_v56 = vpack.c.bf16 %v40_v34, %v39_v35 }
   0xe   :  { %519 = vmatpush3.bf16.xpose.msk.msra.mxu0 %vm634_vm1, %v514_v10  ;;  %v562_v33 = vpop.eup %561  ;;  %v112_v50 = vsel %vm50_vm0, %v72_v46, 0.0  ;;  %v121_v54 = vsel %vm50_vm0, %v75_v51, 0.0  ;;  %v544_v57 = vpack.c.bf16 %v42_v41, %v41_v42  ;;  %v550_v58 = vpack.c.bf16 %v44_v47, %v43_v48  ;;  %p574_p3 = por %p573_p2, %p572_p1 }
   0xf   :  { %522 = vmatprep.subr.msk.bf16.mxu0 %vm634_vm1, %v520_v26  ;;  %556 = vpush %v562_v33  ;;  %v118_v55 = vsel %vm50_vm0, %v74_v52, 0.0  ;;  %v735_v9 = vand.u32 127, %v286_v6  ;;  %v738_v12 = vshrl.u32 %v286_v6, 7  ;;  %vm297_vm2 = vcmask 130112  }
  0x10   :  { %vm304_vm3 = vcmask 195712   ;;  %vm311_vm4 = vcmask 261312   ;;  %vm318_vm5 = vcmask 326912   ;;  %vm325_vm6 = vcmask 392512   ;;  %p575_p4 = pnand %p574_p3, %p568_p0 }
  0x11   :  { %98 = vadd.xlane.f32.xlu1 %v97_v29  ;;  %95 = vadd.xlane.f32.xlu0 %v94_v30  ;;  %v292_v10 = vadd.s32 4294967288, %v735_v9  ;;  %v299_v17 = vadd.s32 4294967280, %v735_v9  ;;  %v290_v18 = vsub.s32 %v735_v9, %v738_v12  ;;  %v306_v21 = vadd.s32 4294967272, %v735_v9 }
  0x12   :  { %v313_v25 = vadd.s32 4294967264, %v735_v9  ;;  %v320_v31 = vadd.s32 4294967256, %v735_v9  ;;  %v334_v38 = vadd.s32 4294967240, %v735_v9  ;;  %vm332_vm7 = vcmask 458112  }
  0x13   :  { %v295_v15 = vsub.s32 %v292_v10, %v738_v12  ;;  %v302_v23 = vsub.s32 %v299_v17, %v738_v12  ;;  %v309_v28 = vsub.s32 %v306_v21, %v738_v12  ;;  %vm339_vm8 = vcmask 523712  }
  0x14   :  { %v316_v34 = vsub.s32 %v313_v25, %v738_v12  ;;  %v323_v41 = vsub.s32 %v320_v31, %v738_v12  ;;  %vm346_vm9 = vcmask 589312   ;;  %vm353_vm10 = vcmask 654912  }
  0x15   :  { %104 = vadd.xlane.f32.xlu1 %v103_v36  ;;  %101 = vadd.xlane.f32.xlu0 %v100_v37  ;;  %v327_v36 = vadd.s32 4294967248, %v735_v9  ;;  %vm360_vm11 = vcmask 720512   ;;  %vm367_vm12 = vcmask 786112   ;;  %v390_v25 = vadd.s32 4294967176, %v735_v9 }
  0x16   :  { %525 = vmatpush3.bf16.xpose.msk.msra.mxu0 %vm634_vm1, %v520_v26  ;;  %vm374_vm13 = vcmask 851712   ;;  %vm381_vm14 = vcmask 917312   ;;  %vm388_vm15 = vcmask 982912  }
  0x17   :  { %528 = vmatprep.subr.msk.bf16.mxu0 %vm634_vm1, %v526_v40  ;;  %v330_v45 = vsub.s32 %v327_v36, %v738_v12 }
  0x19   :  { %110 = vadd.xlane.f32.xlu1 %v109_v43  ;;  %107 = vadd.xlane.f32.xlu0 %v106_v44  ;;  %v341_v43 = vadd.s32 4294967232, %v735_v9 }
  0x1d   :  { %116 = vadd.xlane.f32.xlu1 %v115_v49  ;;  %113 = vadd.xlane.f32.xlu0 %v112_v50  ;;  %v337_v49 = vsub.s32 %v334_v38, %v738_v12  ;;  %v348_v50 = vadd.s32 4294967224, %v735_v9 }
  0x1e   :  { %531 = vmatpush3.bf16.xpose.msk.msra.mxu0 %vm634_vm1, %v526_v40 }
  0x1f   :  { %534 = vmatprep.subr.msk.bf16.mxu0 %vm634_vm1, %v532_v53 }
  0x21   :  { %122 = vadd.xlane.f32.xlu1 %v121_v54  ;;  %119 = vadd.xlane.f32.xlu0 %v118_v55 }
  0x26   :  { %537 = vmatpush3.bf16.xpose.msk.msra.mxu0 %vm634_vm1, %v532_v53  ;;  %v344_v53 = vsub.s32 %v341_v43, %v738_v12 }
  0x27   :  { %540 = vmatprep.subr.msk.bf16.mxu0 %vm634_vm1, %v538_v56 }
  0x2e   :  { %543 = vmatpush3.bf16.xpose.msk.msra.mxu0 %vm634_vm1, %v538_v56 }
  0x2f   :  { %546 = vmatprep.subr.msk.bf16.mxu0 %vm634_vm1, %v544_v57 }
  0x36   :  { %549 = vmatpush3.bf16.xpose.msk.msra.mxu0 %vm634_vm1, %v544_v57 }
  0x37   :  { %552 = vmatprep.subr.msk.bf16.mxu0 %vm634_vm1, %v550_v58 }
  0x3e   :  { %555 = vmatpush3.bf16.xpose.msk.msra.mxu0 %vm634_vm1, %v550_v58  ;;  %v355_v58 = vadd.s32 4294967216, %v735_v9 }
  0x40   :  { %s557_s26 = spop %556 }
  0x41   :  { %v45_v61 = vstv %s557_s26  ;;  %s59_s2 = smul.f32 -0.5, %s557_s26 }
  0x42   :  { %v47_v62 = vmul.f32 %v45_v61, %v28_v59  ;;  %v46_v63 = vmul.f32 %v45_v61, %v27_v60 }
  0x43   :  { %v740_v13 = vstv %s59_s2 }
  0x44   :  { %505 = vmatprep.mubr.msk.f32.mxu0 %vm50_vm0, %v46_v63  ;;  %v49_v0 = vmul.f32 %v47_v62, %v28_v59  ;;  %v48_v1 = vmul.f32 %v46_v63, %v27_v60  ;;  %v351_v59 = vsub.s32 %v348_v50, %v738_v12  ;;  %v362_v60 = vadd.s32 4294967208, %v735_v9 }
  0x45   :  { %506 = vmatmul.mubr.msk.f32.vlgmr.msra.gmra.mrb[0].mxu0 %vm50_vm0, %v47_v62  ;;  %v416_v50 = vstv %s26_s28 }
  0x46   :  { %v54_v2 = vsel %vm50_vm0, %v49_v0, 0.0  ;;  %v51_v3 = vsel %vm50_vm0, %v48_v1, 0.0  ;;  %v369_v0 = vadd.s32 4294967200, %v735_v9  ;;  %v365_v6 = vsub.s32 %v362_v60, %v738_v12 }
  0x47   :  { %55 = vadd.xlane.f32.xlu1 %v54_v2  ;;  %52 = vadd.xlane.f32.xlu0 %v51_v3  ;;  %vm395_vm0 = vcmask 1048512  }
  0x92   :  { %v78_v4 = vpop.xlane.xlu0 %77  ;;  %v84_v5 = vpop.xlane.xlu1 %83 }
  0x93   :  { %v125_v19 = vmul.f32 %v740_v13, %v78_v4  ;;  %v127_v24 = vmul.f32 %v740_v13, %v84_v5  ;;  %v358_v4 = vsub.s32 %v355_v58, %v738_v12 }
  0x95   :  { %v291_v27 = vrot.slane %v125_v19, %v290_v18  ;;  %v303_v33 = vrot.slane %v127_v24, %v302_v23  ;;  %v383_v19 = vadd.s32 4294967184, %v735_v9 }
  0x96   :  { %v81_v7 = vpop.xlane.xlu0 %80  ;;  %v87_v8 = vpop.xlane.xlu1 %86 }
  0x97   :  { %v126_v16 = vmul.f32 %v740_v13, %v81_v7  ;;  %v128_v29 = vmul.f32 %v740_v13, %v87_v8  ;;  %v376_v7 = vadd.s32 4294967192, %v735_v9 }
  0x99   :  { %v296_v22 = vrot.slane %v126_v16, %v295_v15  ;;  %v310_v40 = vrot.slane %v128_v29, %v309_v28  ;;  %v372_v15 = vsub.s32 %v369_v0, %v738_v12  ;;  %v379_v21 = vsub.s32 %v376_v7, %v738_v12 }
  0x9a   :  { %v90_v11 = vpop.xlane.xlu0 %89  ;;  %v93_v14 = vpop.xlane.xlu1 %92  ;;  %v386_v29 = vsub.s32 %v383_v19, %v738_v12 }
  0x9b   :  { %v298_v30 = vsel %vm297_vm2, %v296_v22, %v291_v27  ;;  %v129_v35 = vmul.f32 %v740_v13, %v90_v11  ;;  %v130_v42 = vmul.f32 %v740_v13, %v93_v14 }
  0x9c   :  { %v305_v37 = vsel %vm304_vm3, %v303_v33, %v298_v30  ;;  %v393_v33 = vsub.s32 %v390_v25, %v738_v12 }
  0x9d   :  { %v317_v44 = vrot.slane %v129_v35, %v316_v34  ;;  %v312_v47 = vsel %vm311_vm4, %v310_v40, %v305_v37  ;;  %v324_v51 = vrot.slane %v130_v42, %v323_v41 }
  0x9e   :  { %v96_v20 = vpop.xlane.xlu0 %95  ;;  %v99_v26 = vpop.xlane.xlu1 %98 }
  0x9f   :  { %v131_v46 = vmul.f32 %v740_v13, %v96_v20  ;;  %v132_v52 = vmul.f32 %v740_v13, %v99_v26  ;;  %v319_v54 = vsel %vm318_vm5, %v317_v44, %v312_v47 }
  0xa0   :  { %v326_v62 = vsel %vm325_vm6, %v324_v51, %v319_v54 }
  0xa1   :  { %v331_v55 = vrot.slane %v131_v46, %v330_v45  ;;  %v338_v61 = vrot.slane %v132_v52, %v337_v49 }
  0xa2   :  { %v102_v32 = vpop.xlane.xlu0 %101  ;;  %v105_v39 = vpop.xlane.xlu1 %104 }
  0xa3   :  { %v133_v56 = vmul.f32 %v740_v13, %v102_v32  ;;  %v134_v63 = vmul.f32 %v740_v13, %v105_v39  ;;  %v333_v2 = vsel %vm332_vm7, %v331_v55, %v326_v62 }
  0xa4   :  { %v340_v11 = vsel %vm339_vm8, %v338_v61, %v333_v2 }
  0xa5   :  { %v345_v3 = vrot.slane %v133_v56, %v344_v53  ;;  %v352_v10 = vrot.slane %v134_v63, %v351_v59 }
  0xa6   :  { %v108_v48 = vpop.xlane.xlu0 %107  ;;  %v111_v57 = vpop.xlane.xlu1 %110 }
  0xa7   :  { %v135_v5 = vmul.f32 %v740_v13, %v108_v48  ;;  %v136_v14 = vmul.f32 %v740_v13, %v111_v57  ;;  %v347_v16 = vsel %vm346_vm9, %v345_v3, %v340_v11 }
  0xa8   :  { %v354_v23 = vsel %vm353_vm10, %v352_v10, %v347_v16 }
  0xa9   :  { %v359_v17 = vrot.slane %v135_v5, %v358_v4  ;;  %v366_v22 = vrot.slane %v136_v14, %v365_v6 }
  0xaa   :  { %v114_v1 = vpop.xlane.xlu0 %113  ;;  %v117_v8 = vpop.xlane.xlu1 %116 }
  0xab   :  { %v137_v18 = vmul.f32 %v740_v13, %v114_v1  ;;  %v138_v24 = vmul.f32 %v740_v13, %v117_v8  ;;  %v361_v26 = vsel %vm360_vm11, %v359_v17, %v354_v23 }
  0xac   :  { %v368_v32 = vsel %vm367_vm12, %v366_v22, %v361_v26 }
  0xad   :  { %v373_v27 = vrot.slane %v137_v18, %v372_v15  ;;  %v380_v31 = vrot.slane %v138_v24, %v379_v21 }
  0xae   :  { %v120_v20 = vpop.xlane.xlu0 %119  ;;  %v123_v28 = vpop.xlane.xlu1 %122 }
  0xaf   :  { %v139_v30 = vmul.f32 %v740_v13, %v120_v20  ;;  %v140_v34 = vmul.f32 %v740_v13, %v123_v28  ;;  %v375_v35 = vsel %vm374_vm13, %v373_v27, %v368_v32 }
  0xb0   :  { %v382_v39 = vsel %vm381_vm14, %v380_v31, %v375_v35 }
  0xb1   :  { %v387_v36 = vrot.slane %v139_v30, %v386_v29  ;;  %v394_v38 = vrot.slane %v140_v34, %v393_v33 }
  0xb3   :  { %v389_v41 = vsel %vm388_vm15, %v387_v36, %v382_v39 }
  0xb4   :  { %v396_v46 = vsel %vm395_vm0, %v394_v38, %v389_v41 }
  0xd4   :  { %v56_v37 = vpop.xlane.xlu1 %55  ;;  %v53_v9 = vpop.xlane.xlu0 %52 }
  0xd5   :  { %v58_v40 = vmul.f32 -0.5, %v56_v37  ;;  %v57_v42 = vmul.f32 -0.5, %v53_v9 }
 0x118   :  { %v507_v43 = vpop.f32.mrb[0].mxu0 }
 0x119   :  { %v267_v44 = vadd.f32 %v507_v43, %v58_v40  ;;  %v261_v45 = vpop.f32.mrb[1].mxu0 }
 0x11a   :  { %v262_v47 = vadd.f32 %v261_v45, %v57_v42 }
 0x11b   :  { %v411_v12 = vadd.f32 %v396_v46, %v267_v44 }
 0x11c   :  { %v410_v48 = vadd.f32 %v396_v46, %v262_v47 }
 0x11d   :  { %v414_v13 = vmul.f32 1.442695, %v411_v12 }
 0x11e   :  { %v412_v49 = vmul.f32 1.442695, %v410_v48 }
 0x11f   :  { %563 = vpow2.f32 %v414_v13 }
 0x120   :  { %565 = vpow2.f32 %v412_v49 }
 0x129   :  { %v564_v51 = vpop.eup %563 }
 0x12a   :  { %v566_v52 = vpop.eup %565  ;;  %v418_v53 = vmul.f32 %v564_v51, %v416_v50 }
 0x12b   :  { %v417_v54 = vmul.f32 %v566_v52, %v416_v50 }
 0x12c   :  { %420 = vst [vmem:[#allocation4 + $0x8] sm:$0xff] %v418_v53 }
 0x12d   :  { %419 = vst [vmem:[#allocation4] sm:$0xff] %v417_v54 }
 0x12e   :  { %578 = shalt.err (!%p575_p4)
}
 0x12f   :  { %s579_s1 = scalar_lea.hbm %s811_s4, 256 }
 0x130   :  { %p580_p5 = scmp.ne.s32.totalorder %s811_s4, %s579_s1  ;;  %p583_p6 = scmp.lt.u32.totalorder %s579_s1, %s811_s4 }
 0x132   :  { %p585_p7 = pnand %p583_p6, %p580_p5 }
 0x134   :  { %588 = shalt.err (!%p585_p7)
}
 0x135   :  { %s592_s12 = smov 128   ;;  %s593_s13 = smov 8  }
 0x136   :  { %432 = dma.vmem_to_hbm [thread:$0]  %s427_s30, 256, %s811_s4, [#allocation5], %s592_s12, %s592_s12, %s593_s13  }
 0x137   :  { %589 = dma.done.wait [#allocation5], 256  }
 0x138   :  { %590 = vsyncadd [#allocation5], 4294967040 }
 0x139   :  { %436 = vsyncpa [#allocation5], 1 }

</bundles_post_ra>
